<compile_context>
chip_gen: v7x
topology: tpu7x:2x2x1
jax: 0.10.0
libtpu: 0.0.40
codegen_flags: <defaults>
</compile_context>

<pallas_src>
import functools
import math

import jax
import jax.numpy as jnp
from jax.experimental import pallas as pl
from jax.experimental.pallas import tpu as pltpu

ALPHA = 1.0  # self.alpha in the module


def _round_up(x, m):
    return (x + m - 1) // m * m


def _cox_kernel(
    x_ref,                       # (TB, X_PAD) bf16  [ x | y_pred | 0-pad ]
    w_sc1_ref, b_sc1_ref,        # (X_PAD, P) bf16 (pre-masked), (1, P) f32
    w_e1_ref, b_e1_ref,          # (P, E1) bf16, (1, E1) f32
    w_e2_ref, b_e2_ref,          # (E1, E2) bf16, (1, E2) f32
    w_d1_ref, b_d1_ref,          # (E2, E2) bf16, (1, E2) f32
    w_d2_ref, b_d2_ref,          # (E2, E1) bf16, (1, E1) f32
    clus_t_ref, c_sq_ref,        # (E2, K) f32, (1, K) f32
    w_l1_ref, b_l1_ref,          # (E2, H3) bf16, (1, H3) f32
    w_xb_ref,                    # (E1, OUT_PAD) bf16  (x_bar -> cols [0, P))
    w_l2a_ref,                   # (H3, OUT_PAD) bf16  (risk emb part -> col P+K)
    wy_col_ref,                  # (X_PAD, 1) bf16     (w_y at row n_input)
    q_sel_ref,                   # (K, OUT_PAD) f32    (0/1 selection: q -> cols [P, P+K))
    y_onehot_ref,                # (1, OUT_PAD) f32    (one-hot at col P+K)
    out_bias_ref,                # (1, OUT_PAD) f32    (x_bar bias + layer2 bias, packed)
    out_ref,                     # (TB, OUT_PAD) f32   packed [x_bar | q | risk | 0]
    *, alpha,
):
    f32 = jnp.float32
    bf16 = jnp.bfloat16
    xb = x_ref[...]                                    # bf16

    def mm(a, w_ref):                                  # bf16 MXU matmul, f32 accumulate
        return jnp.dot(a.astype(bf16), w_ref[...], preferred_element_type=f32)

    # ---- sc1 (pathway-masked weight, mask applied in wrapper) + tanh ----
    x1 = jnp.tanh(mm(xb, w_sc1_ref) + b_sc1_ref[...])

    # ---- autoencoder ----
    h1 = jnp.maximum(mm(x1, w_e1_ref) + b_e1_ref[...], 0.0)
    z = jnp.maximum(mm(h1, w_e2_ref) + b_e2_ref[...], 0.0)
    d1 = jnp.maximum(mm(z, w_d1_ref) + b_d1_ref[...], 0.0)
    d2 = jnp.maximum(mm(d1, w_d2_ref) + b_d2_ref[...], 0.0)

    # ---- student-t soft assignment: ||z - c||^2 = ||z||^2 + ||c||^2 - 2 z.c (MXU) ----
    z_sq = jnp.sum(z * z, axis=1, keepdims=True)                       # (TB, 1)
    cross = jnp.dot(z, clus_t_ref[...], preferred_element_type=f32)    # (TB, K), f32
    dist = jnp.maximum(z_sq + c_sq_ref[...] - 2.0 * cross, 0.0)        # clamp cancellation
    q = pl.reciprocal(1.0 + dist * (1.0 / alpha), approx=True)
    exponent = (alpha + 1.0) / 2.0
    if exponent != 1.0:                               # trace-time constant (alpha=1 -> skip)
        q = q ** exponent
    q = q * pl.reciprocal(jnp.sum(q, axis=1, keepdims=True), approx=True)

    # ---- risk head (dropout = identity: eval-mode forward) ----
    emb = mm(z, w_l1_ref) + b_l1_ref[...]                              # (TB, H3)
    y_term = jnp.dot(xb, wy_col_ref[...], preferred_element_type=f32)  # (TB, 1) = y_pred * w_y

    # ---- packed, lane-dense store: [x_bar | q | risk | zero pad] ----
    out_ref[...] = (
        mm(d2, w_xb_ref)                                               # x_bar -> cols [0, P)
        + jnp.dot(q, q_sel_ref[...], preferred_element_type=f32)       # q     -> cols [P, P+K)
        + mm(emb, w_l2a_ref)                                           # emb part of risk -> P+K
        + y_term * y_onehot_ref[...]                                   # y_pred * w_y     -> P+K
        + out_bias_ref[...]                                            # x_bar bias + layer2 bias
    )


def cox_kmeans_pathway_forward(x, y_pred, params, *, alpha=ALPHA, batch_tile=256):
    """Pallas forward of CoxKmeans_pathway. Returns (x_bar, q, risk)."""
    f32, bf16 = jnp.float32, jnp.bfloat16
    x = jnp.asarray(x, f32)
    y_pred = jnp.asarray(y_pred, f32).reshape(-1, 1)   # .view(-1, 1)

    B, n_input = x.shape
    P = params["sc1_w"].shape[0]                       # Pathway_Nodes
    K, E2 = params["cluster"].shape                    # n_clusters, n_enc_2
    E1 = params["enc1_w"].shape[0]
    H3 = params["layer1_w"].shape[0]

    TB = batch_tile if B >= batch_tile else _round_up(B, 8)
    B_pad = _round_up(B, TB)
    X_PAD = _round_up(n_input + 1, 128)                # x columns + y_pred column, lane-dense
    OUT_PAD = _round_up(P + K + 1, 128)                # packed [x_bar | q | risk], lane-dense

    # ---- input slab: [x | y_pred | 0], bf16 ----
    x_slab = jnp.zeros((B_pad, X_PAD), f32)
    x_slab = x_slab.at[:B, :n_input].set(x)
    x_slab = x_slab.at[:B, n_input:n_input + 1].set(y_pred)
    x_slab = x_slab.astype(bf16)

    # ---- weight prep (PyTorch [out, in] -> [in, out], padded where needed, bf16) ----
    def lin_w(w, rows_pad=None, cols_pad=None, col_offset=0):
        wt = jnp.asarray(w, f32).T
        r, c = wt.shape
        rp = rows_pad if rows_pad is not None else r
        cp = cols_pad if cols_pad is not None else c
        return jnp.zeros((rp, cp), f32).at[:r, col_offset:col_offset + c].set(wt).astype(bf16)

    def brow(b):
        return jnp.asarray(b, f32).reshape(1, -1)

    # pathway mask hoisted out of the kernel (binary mask -> applying once is equivalent)
    w_sc1_masked = jnp.asarray(params["sc1_w"], f32) * jnp.asarray(params["pathway_mask"], f32)
    w_sc1 = lin_w(w_sc1_masked, rows_pad=X_PAD)        # zero rows for y_pred / pad columns
    b_sc1 = brow(params["sc1_b"])

    w_e1, b_e1 = lin_w(params["enc1_w"]), brow(params["enc1_b"])
    w_e2, b_e2 = lin_w(params["enc2_w"]), brow(params["enc2_b"])
    w_d1, b_d1 = lin_w(params["dec1_w"]), brow(params["dec1_b"])
    w_d2, b_d2 = lin_w(params["dec2_w"]), brow(params["dec2_b"])
    w_l1, b_l1 = lin_w(params["layer1_w"]), brow(params["layer1_b"])

    # packed-output projections
    w_xb = lin_w(params["xbar_w"], cols_pad=OUT_PAD, col_offset=0)        # (E1, OUT_PAD)
    l2_w = jnp.asarray(params["layer2_w"], f32)                           # (1, H3+1)
    w_l2a = jnp.zeros((H3, OUT_PAD), f32).at[:, P + K].set(l2_w[0, :H3]).astype(bf16)
    wy_col = jnp.zeros((X_PAD, 1), f32).at[n_input, 0].set(l2_w[0, H3]).astype(bf16)
    q_sel = jnp.zeros((K, OUT_PAD), f32).at[:, P:P + K].set(jnp.eye(K, dtype=f32))
    y_onehot = jnp.zeros((1, OUT_PAD), f32).at[0, P + K].set(1.0)
    out_bias = jnp.zeros((1, OUT_PAD), f32)
    out_bias = out_bias.at[0, :P].set(jnp.asarray(params["xbar_b"], f32))
    out_bias = out_bias.at[0, P + K].set(jnp.asarray(params["layer2_b"], f32).reshape(()))

    clus = jnp.asarray(params["cluster"], f32)
    clus_t = clus.T                                                       # (E2, K)
    c_sq = jnp.sum(clus * clus, axis=1).reshape(1, K)

    inputs = [
        x_slab,
        w_sc1, b_sc1,
        w_e1, b_e1, w_e2, b_e2,
        w_d1, b_d1, w_d2, b_d2,
        clus_t, c_sq,
        w_l1, b_l1,
        w_xb, w_l2a, wy_col, q_sel, y_onehot, out_bias,
    ]

    # batch-streamed blocks; constant index_map keeps weights/biases VMEM-resident
    in_specs = [pl.BlockSpec((TB, X_PAD), lambda i: (i, 0))]
    in_specs += [pl.BlockSpec(a.shape, lambda i: (0, 0)) for a in inputs[1:]]
    out_spec = pl.BlockSpec((TB, OUT_PAD), lambda i: (i, 0))

    # explicit VMEM budget (residents + double-buffered streamed blocks + slack)
    resident = sum(int(a.size) * a.dtype.itemsize for a in inputs[1:])
    streamed = 2 * (TB * X_PAD * 2 + TB * OUT_PAD * 4)
    vmem_limit = int(min(max(2 * resident + 2 * streamed + (4 << 20), 16 << 20), 48 << 20))

    out = pl.pallas_call(
        functools.partial(_cox_kernel, alpha=float(alpha)),
        out_shape=jax.ShapeDtypeStruct((B_pad, OUT_PAD), f32),
        grid=(B_pad // TB,),
        in_specs=in_specs,
        out_specs=out_spec,
        compiler_params=pltpu.CompilerParams(
            dimension_semantics=("parallel",),        # megacore sharding on v7x
            vmem_limit_bytes=vmem_limit,
        ),
    )(*inputs)

    x_bar = out[:B, :P]
    q = out[:B, P:P + K]
    risk = out[:B, P + K:P + K + 1]
    return x_bar, q, risk


def _reference_forward(x, y_pred, params, alpha=ALPHA):
    """Pure-JAX f32 reference replicating the PyTorch forward."""
    w1 = jnp.asarray(params["sc1_w"], jnp.float32) * jnp.asarray(params["pathway_mask"], jnp.float32)
    x1 = jnp.tanh(x @ w1.T + params["sc1_b"])
    h1 = jax.nn.relu(x1 @ params["enc1_w"].T + params["enc1_b"])
    z = jax.nn.relu(h1 @ params["enc2_w"].T + params["enc2_b"])
    d1 = jax.nn.relu(z @ params["dec1_w"].T + params["dec1_b"])
    d2 = jax.nn.relu(d1 @ params["dec2_w"].T + params["dec2_b"])
    x_bar = d2 @ params["xbar_w"].T + params["xbar_b"]
    diff = z[:, None, :] - params["cluster"][None, :, :]
    q = 1.0 / (1.0 + jnp.sum(diff * diff, axis=2) / alpha)
    q = q ** ((alpha + 1.0) / 2.0)
    q = q / jnp.sum(q, axis=1, keepdims=True)
    emb = z @ params["layer1_w"].T + params["layer1_b"]
    emb = jnp.concatenate([emb, jnp.asarray(y_pred, jnp.float32).reshape(-1, 1)], axis=1)
    risk = emb @ params["layer2_w"].T + params["layer2_b"]
    return x_bar, q, risk


def _init_linear(key, out_dim, in_dim):
    """PyTorch nn.Linear default init (uniform +/- 1/sqrt(fan_in))."""
    k_w, k_b = jax.random.split(key)
    bound = 1.0 / math.sqrt(in_dim)
    w = jax.random.uniform(k_w, (out_dim, in_dim), jnp.float32, -bound, bound)
    b = jax.random.uniform(k_b, (out_dim,), jnp.float32, -bound, bound)
    return w, b


if __name__ == "__main__":
    # Small synthetic config consistent with the module:
    #   nn_config = {'hidden_layers': [32, 16, 8], 'n_clusters': 4, 'dropout': 0.1}
    n_input = 32          # input_nodes (genes)
    pathway_nodes = 16    # Pathway_Nodes
    n_enc_1, n_enc_2, h3 = 32, 16, 8
    n_clusters = 4
    batch = 8

    key = jax.random.PRNGKey(0)
    keys = jax.random.split(key, 12)

    params = {}
    params["sc1_w"], params["sc1_b"] = _init_linear(keys[0], pathway_nodes, n_input)
    params["enc1_w"], params["enc1_b"] = _init_linear(keys[1], n_enc_1, pathway_nodes)
    params["enc2_w"], params["enc2_b"] = _init_linear(keys[2], n_enc_2, n_enc_1)
    params["dec1_w"], params["dec1_b"] = _init_linear(keys[3], n_enc_2, n_enc_2)   # n_dec_1 = hidden[1]
    params["dec2_w"], params["dec2_b"] = _init_linear(keys[4], n_enc_1, n_enc_2)   # n_dec_2 = hidden[0]
    params["xbar_w"], params["xbar_b"] = _init_linear(keys[5], pathway_nodes, n_enc_1)
    params["layer1_w"], params["layer1_b"] = _init_linear(keys[6], h3, n_enc_2)
    params["layer2_w"], params["layer2_b"] = _init_linear(keys[7], 1, h3 + 1)
    # cluster_layer: xavier_normal_
    xav_std = math.sqrt(2.0 / (n_clusters + n_enc_2))
    params["cluster"] = xav_std * jax.random.normal(keys[8], (n_clusters, n_enc_2), jnp.float32)
    # binary pathway mask [Pathway_Nodes, n_input]
    params["pathway_mask"] = (
        jax.random.uniform(keys[9], (pathway_nodes, n_input)) > 0.5
    ).astype(jnp.float32)

    # deterministic example inputs
    x = jax.random.normal(keys[10], (batch, n_input), jnp.float32)
    y_pred = jax.random.normal(keys[11], (batch,), jnp.float32)

    x_bar, q, risk = cox_kmeans_pathway_forward(x, y_pred, params)
    jax.block_until_ready((x_bar, q, risk))

    assert x_bar.shape == (batch, pathway_nodes)
    assert q.shape == (batch, n_clusters)
    assert risk.shape == (batch, 1)
    assert bool(jnp.all(jnp.isfinite(x_bar))) and bool(jnp.all(jnp.isfinite(q))) \
        and bool(jnp.all(jnp.isfinite(risk)))

    # loose parity check vs f32 reference (kernel uses bf16 MXU operands + approx reciprocal)
    xb_r, q_r, r_r = _reference_forward(x, y_pred, params)
    assert float(jnp.max(jnp.abs(x_bar - xb_r))) < 0.1
    assert float(jnp.max(jnp.abs(q - q_r))) < 0.1
    assert float(jnp.max(jnp.abs(risk - r_r))) < 0.1

    print("KERNEL_OK")
</pallas_src>

<mosaic_0001>
module attributes {stable_mosaic.version = 11 : i64} {
  func.func @_cox_kernel(%arg0: i32, %arg1: memref<8x128xbf16, #tpu.memory_space<vmem>>, %arg2: memref<128x16xbf16, #tpu.memory_space<vmem>>, %arg3: memref<1x16xf32, #tpu.memory_space<vmem>>, %arg4: memref<16x32xbf16, #tpu.memory_space<vmem>>, %arg5: memref<1x32xf32, #tpu.memory_space<vmem>>, %arg6: memref<32x16xbf16, #tpu.memory_space<vmem>>, %arg7: memref<1x16xf32, #tpu.memory_space<vmem>>, %arg8: memref<16x16xbf16, #tpu.memory_space<vmem>>, %arg9: memref<1x16xf32, #tpu.memory_space<vmem>>, %arg10: memref<16x32xbf16, #tpu.memory_space<vmem>>, %arg11: memref<1x32xf32, #tpu.memory_space<vmem>>, %arg12: memref<16x4xf32, #tpu.memory_space<vmem>>, %arg13: memref<1x4xf32, #tpu.memory_space<vmem>>, %arg14: memref<16x8xbf16, #tpu.memory_space<vmem>>, %arg15: memref<1x8xf32, #tpu.memory_space<vmem>>, %arg16: memref<32x128xbf16, #tpu.memory_space<vmem>>, %arg17: memref<8x128xbf16, #tpu.memory_space<vmem>>, %arg18: memref<128x1xbf16, #tpu.memory_space<vmem>>, %arg19: memref<4x128xf32, #tpu.memory_space<vmem>>, %arg20: memref<1x128xf32, #tpu.memory_space<vmem>>, %arg21: memref<1x128xf32, #tpu.memory_space<vmem>>, %arg22: memref<8x128xf32, #tpu.memory_space<vmem>>) attributes {dimension_semantics = [#tpu.dimension_semantics<parallel>], iteration_bounds = array<i64: 1>, scalar_prefetch = 0 : i64, scratch_operands = 0 : i64, tpu.core_type = #tpu.core_type<tc>, window_params = [{transform_indices = @transform_0, window_bounds = array<i64: 8, 128>}, {pipeline_mode = #tpu.pipeline_mode<synchronous>, transform_indices = @transform_1, window_bounds = array<i64: 128, 16>}, {pipeline_mode = #tpu.pipeline_mode<synchronous>, transform_indices = @transform_2, window_bounds = array<i64: 1, 16>}, {pipeline_mode = #tpu.pipeline_mode<synchronous>, transform_indices = @transform_3, window_bounds = array<i64: 16, 32>}, {pipeline_mode = #tpu.pipeline_mode<synchronous>, transform_indices = @transform_4, window_bounds = array<i64: 1, 32>}, {pipeline_mode = #tpu.pipeline_mode<synchronous>, transform_indices = @transform_5, window_bounds = array<i64: 32, 16>}, {pipeline_mode = #tpu.pipeline_mode<synchronous>, transform_indices = @transform_6, window_bounds = array<i64: 1, 16>}, {pipeline_mode = #tpu.pipeline_mode<synchronous>, transform_indices = @transform_7, window_bounds = array<i64: 16, 16>}, {pipeline_mode = #tpu.pipeline_mode<synchronous>, transform_indices = @transform_8, window_bounds = array<i64: 1, 16>}, {pipeline_mode = #tpu.pipeline_mode<synchronous>, transform_indices = @transform_9, window_bounds = array<i64: 16, 32>}, {pipeline_mode = #tpu.pipeline_mode<synchronous>, transform_indices = @transform_10, window_bounds = array<i64: 1, 32>}, {pipeline_mode = #tpu.pipeline_mode<synchronous>, transform_indices = @transform_11, window_bounds = array<i64: 16, 4>}, {pipeline_mode = #tpu.pipeline_mode<synchronous>, transform_indices = @transform_12, window_bounds = array<i64: 1, 4>}, {pipeline_mode = #tpu.pipeline_mode<synchronous>, transform_indices = @transform_13, window_bounds = array<i64: 16, 8>}, {pipeline_mode = #tpu.pipeline_mode<synchronous>, transform_indices = @transform_14, window_bounds = array<i64: 1, 8>}, {pipeline_mode = #tpu.pipeline_mode<synchronous>, transform_indices = @transform_15, window_bounds = array<i64: 32, 128>}, {pipeline_mode = #tpu.pipeline_mode<synchronous>, transform_indices = @transform_16, window_bounds = array<i64: 8, 128>}, {pipeline_mode = #tpu.pipeline_mode<synchronous>, transform_indices = @transform_17, window_bounds = array<i64: 128, 1>}, {pipeline_mode = #tpu.pipeline_mode<synchronous>, transform_indices = @transform_18, window_bounds = array<i64: 4, 128>}, {pipeline_mode = #tpu.pipeline_mode<synchronous>, transform_indices = @transform_19, window_bounds = array<i64: 1, 128>}, {pipeline_mode = #tpu.pipeline_mode<synchronous>, transform_indices = @transform_20, window_bounds = array<i64: 1, 128>}, {transform_indices = @transform_21, window_bounds = array<i64: 8, 128>}]} {
    %c0 = arith.constant 0 : index
    %c0_0 = arith.constant 0 : index
    %0 = vector.load %arg1[%c0, %c0_0] : memref<8x128xbf16, #tpu.memory_space<vmem>>, vector<8x128xbf16>
    %c0_1 = arith.constant 0 : index
    %c0_2 = arith.constant 0 : index
    %1 = vector.load %arg2[%c0_1, %c0_2] : memref<128x16xbf16, #tpu.memory_space<vmem>>, vector<128x16xbf16>
    %cst = arith.constant dense<0.000000e+00> : vector<8x16xf32>
    %2 = tpu.matmul %0, %1, %cst {dimension_numbers = #tpu.dot_dimension_numbers<[1], [0], [0], [1], [0, 0, 1, 1], [], []>} : vector<8x128xbf16>, vector<128x16xbf16>, vector<8x16xf32> -> vector<8x16xf32>
    %c0_3 = arith.constant 0 : index
    %c0_4 = arith.constant 0 : index
    %3 = vector.load %arg3[%c0_3, %c0_4] : memref<1x16xf32, #tpu.memory_space<vmem>>, vector<1x16xf32>
    %4 = vector.broadcast %3 : vector<1x16xf32> to vector<8x16xf32>
    %5 = arith.addf %2, %4 : vector<8x16xf32>
    %6 = math.tanh %5 : vector<8x16xf32>
    %7 = arith.truncf %6 : vector<8x16xf32> to vector<8x16xbf16>
    %c0_5 = arith.constant 0 : index
    %c0_6 = arith.constant 0 : index
    %8 = vector.load %arg4[%c0_5, %c0_6] : memref<16x32xbf16, #tpu.memory_space<vmem>>, vector<16x32xbf16>
    %cst_7 = arith.constant dense<0.000000e+00> : vector<8x32xf32>
    %9 = tpu.matmul %7, %8, %cst_7 {dimension_numbers = #tpu.dot_dimension_numbers<[1], [0], [0], [1], [0, 0, 1, 1], [], []>} : vector<8x16xbf16>, vector<16x32xbf16>, vector<8x32xf32> -> vector<8x32xf32>
    %c0_8 = arith.constant 0 : index
    %c0_9 = arith.constant 0 : index
    %10 = vector.load %arg5[%c0_8, %c0_9] : memref<1x32xf32, #tpu.memory_space<vmem>>, vector<1x32xf32>
    %11 = vector.broadcast %10 : vector<1x32xf32> to vector<8x32xf32>
    %12 = arith.addf %9, %11 : vector<8x32xf32>
    %cst_10 = arith.constant 0.000000e+00 : f32
    %13 = vector.broadcast %cst_10 : f32 to vector<8x32xf32>
    %14 = arith.maximumf %12, %13 : vector<8x32xf32>
    %15 = arith.truncf %14 : vector<8x32xf32> to vector<8x32xbf16>
    %c0_11 = arith.constant 0 : index
    %c0_12 = arith.constant 0 : index
    %16 = vector.load %arg6[%c0_11, %c0_12] : memref<32x16xbf16, #tpu.memory_space<vmem>>, vector<32x16xbf16>
    %cst_13 = arith.constant dense<0.000000e+00> : vector<8x16xf32>
    %17 = tpu.matmul %15, %16, %cst_13 {dimension_numbers = #tpu.dot_dimension_numbers<[1], [0], [0], [1], [0, 0, 1, 1], [], []>} : vector<8x32xbf16>, vector<32x16xbf16>, vector<8x16xf32> -> vector<8x16xf32>
    %c0_14 = arith.constant 0 : index
    %c0_15 = arith.constant 0 : index
    %18 = vector.load %arg7[%c0_14, %c0_15] : memref<1x16xf32, #tpu.memory_space<vmem>>, vector<1x16xf32>
    %19 = vector.broadcast %18 : vector<1x16xf32> to vector<8x16xf32>
    %20 = arith.addf %17, %19 : vector<8x16xf32>
    %cst_16 = arith.constant 0.000000e+00 : f32
    %21 = vector.broadcast %cst_16 : f32 to vector<8x16xf32>
    %22 = arith.maximumf %20, %21 : vector<8x16xf32>
    %23 = arith.truncf %22 : vector<8x16xf32> to vector<8x16xbf16>
    %c0_17 = arith.constant 0 : index
    %c0_18 = arith.constant 0 : index
    %24 = vector.load %arg8[%c0_17, %c0_18] : memref<16x16xbf16, #tpu.memory_space<vmem>>, vector<16x16xbf16>
    %cst_19 = arith.constant dense<0.000000e+00> : vector<8x16xf32>
    %25 = tpu.matmul %23, %24, %cst_19 {dimension_numbers = #tpu.dot_dimension_numbers<[1], [0], [0], [1], [0, 0, 1, 1], [], []>} : vector<8x16xbf16>, vector<16x16xbf16>, vector<8x16xf32> -> vector<8x16xf32>
    %c0_20 = arith.constant 0 : index
    %c0_21 = arith.constant 0 : index
    %26 = vector.load %arg9[%c0_20, %c0_21] : memref<1x16xf32, #tpu.memory_space<vmem>>, vector<1x16xf32>
    %27 = vector.broadcast %26 : vector<1x16xf32> to vector<8x16xf32>
    %28 = arith.addf %25, %27 : vector<8x16xf32>
    %cst_22 = arith.constant 0.000000e+00 : f32
    %29 = vector.broadcast %cst_22 : f32 to vector<8x16xf32>
    %30 = arith.maximumf %28, %29 : vector<8x16xf32>
    %31 = arith.truncf %30 : vector<8x16xf32> to vector<8x16xbf16>
    %c0_23 = arith.constant 0 : index
    %c0_24 = arith.constant 0 : index
    %32 = vector.load %arg10[%c0_23, %c0_24] : memref<16x32xbf16, #tpu.memory_space<vmem>>, vector<16x32xbf16>
    %cst_25 = arith.constant dense<0.000000e+00> : vector<8x32xf32>
    %33 = tpu.matmul %31, %32, %cst_25 {dimension_numbers = #tpu.dot_dimension_numbers<[1], [0], [0], [1], [0, 0, 1, 1], [], []>} : vector<8x16xbf16>, vector<16x32xbf16>, vector<8x32xf32> -> vector<8x32xf32>
    %c0_26 = arith.constant 0 : index
    %c0_27 = arith.constant 0 : index
    %34 = vector.load %arg11[%c0_26, %c0_27] : memref<1x32xf32, #tpu.memory_space<vmem>>, vector<1x32xf32>
    %35 = vector.broadcast %34 : vector<1x32xf32> to vector<8x32xf32>
    %36 = arith.addf %33, %35 : vector<8x32xf32>
    %cst_28 = arith.constant 0.000000e+00 : f32
    %37 = vector.broadcast %cst_28 : f32 to vector<8x32xf32>
    %38 = arith.maximumf %36, %37 : vector<8x32xf32>
    %39 = arith.mulf %22, %22 : vector<8x16xf32>
    %cst_29 = arith.constant dense<0.000000e+00> : vector<8xf32>
    %40 = vector.multi_reduction <add>, %39, %cst_29 [1] : vector<8x16xf32> to vector<8xf32>
    %41 = vector.shape_cast %40 : vector<8xf32> to vector<8x1xf32>
    %c0_30 = arith.constant 0 : index
    %c0_31 = arith.constant 0 : index
    %42 = vector.load %arg12[%c0_30, %c0_31] : memref<16x4xf32, #tpu.memory_space<vmem>>, vector<16x4xf32>
    %cst_32 = arith.constant dense<0.000000e+00> : vector<8x4xf32>
    %43 = tpu.matmul %22, %42, %cst_32 {dimension_numbers = #tpu.dot_dimension_numbers<[1], [0], [0], [1], [0, 0, 1, 1], [], []>} : vector<8x16xf32>, vector<16x4xf32>, vector<8x4xf32> -> vector<8x4xf32>
    %c0_33 = arith.constant 0 : index
    %c0_34 = arith.constant 0 : index
    %44 = vector.load %arg13[%c0_33, %c0_34] : memref<1x4xf32, #tpu.memory_space<vmem>>, vector<1x4xf32>
    %45 = vector.broadcast %41 : vector<8x1xf32> to vector<8x4xf32>
    %46 = vector.broadcast %44 : vector<1x4xf32> to vector<8x4xf32>
    %47 = arith.addf %45, %46 : vector<8x4xf32>
    %cst_35 = arith.constant 2.000000e+00 : f32
    %48 = vector.broadcast %cst_35 : f32 to vector<8x4xf32>
    %49 = arith.mulf %48, %43 : vector<8x4xf32>
    %50 = arith.subf %47, %49 : vector<8x4xf32>
    %cst_36 = arith.constant 0.000000e+00 : f32
    %51 = vector.broadcast %cst_36 : f32 to vector<8x4xf32>
    %52 = arith.maximumf %50, %51 : vector<8x4xf32>
    %cst_37 = arith.constant 1.000000e+00 : f32
    %53 = vector.broadcast %cst_37 : f32 to vector<8x4xf32>
    %54 = arith.mulf %52, %53 : vector<8x4xf32>
    %cst_38 = arith.constant 1.000000e+00 : f32
    %55 = vector.broadcast %cst_38 : f32 to vector<8x4xf32>
    %56 = arith.addf %55, %54 : vector<8x4xf32>
    %57 = tpu.reciprocal %56 {approx = true} : vector<8x4xf32> -> vector<8x4xf32>
    %cst_39 = arith.constant dense<0.000000e+00> : vector<8xf32>
    %58 = vector.multi_reduction <add>, %57, %cst_39 [1] : vector<8x4xf32> to vector<8xf32>
    %59 = vector.shape_cast %58 : vector<8xf32> to vector<8x1xf32>
    %60 = tpu.reciprocal %59 {approx = true} : vector<8x1xf32> -> vector<8x1xf32>
    %61 = vector.broadcast %60 : vector<8x1xf32> to vector<8x4xf32>
    %62 = arith.mulf %57, %61 : vector<8x4xf32>
    %63 = arith.truncf %22 : vector<8x16xf32> to vector<8x16xbf16>
    %c0_40 = arith.constant 0 : index
    %c0_41 = arith.constant 0 : index
    %64 = vector.load %arg14[%c0_40, %c0_41] : memref<16x8xbf16, #tpu.memory_space<vmem>>, vector<16x8xbf16>
    %cst_42 = arith.constant dense<0.000000e+00> : vector<8x8xf32>
    %65 = tpu.matmul %63, %64, %cst_42 {dimension_numbers = #tpu.dot_dimension_numbers<[1], [0], [0], [1], [0, 0, 1, 1], [], []>} : vector<8x16xbf16>, vector<16x8xbf16>, vector<8x8xf32> -> vector<8x8xf32>
    %c0_43 = arith.constant 0 : index
    %c0_44 = arith.constant 0 : index
    %66 = vector.load %arg15[%c0_43, %c0_44] : memref<1x8xf32, #tpu.memory_space<vmem>>, vector<1x8xf32>
    %67 = vector.broadcast %66 : vector<1x8xf32> to vector<8x8xf32>
    %68 = arith.addf %65, %67 : vector<8x8xf32>
    %c0_45 = arith.constant 0 : index
    %c0_46 = arith.constant 0 : index
    %69 = vector.load %arg18[%c0_45, %c0_46] : memref<128x1xbf16, #tpu.memory_space<vmem>>, vector<128x1xbf16>
    %cst_47 = arith.constant dense<0.000000e+00> : vector<8x1xf32>
    %70 = tpu.matmul %0, %69, %cst_47 {dimension_numbers = #tpu.dot_dimension_numbers<[1], [0], [0], [1], [0, 0, 1, 1], [], []>} : vector<8x128xbf16>, vector<128x1xbf16>, vector<8x1xf32> -> vector<8x1xf32>
    %71 = arith.truncf %38 : vector<8x32xf32> to vector<8x32xbf16>
    %c0_48 = arith.constant 0 : index
    %c0_49 = arith.constant 0 : index
    %72 = vector.load %arg16[%c0_48, %c0_49] : memref<32x128xbf16, #tpu.memory_space<vmem>>, vector<32x128xbf16>
    %cst_50 = arith.constant dense<0.000000e+00> : vector<8x128xf32>
    %73 = tpu.matmul %71, %72, %cst_50 {dimension_numbers = #tpu.dot_dimension_numbers<[1], [0], [0], [1], [0, 0, 1, 1], [], []>} : vector<8x32xbf16>, vector<32x128xbf16>, vector<8x128xf32> -> vector<8x128xf32>
    %c0_51 = arith.constant 0 : index
    %c0_52 = arith.constant 0 : index
    %74 = vector.load %arg19[%c0_51, %c0_52] : memref<4x128xf32, #tpu.memory_space<vmem>>, vector<4x128xf32>
    %cst_53 = arith.constant dense<0.000000e+00> : vector<8x128xf32>
    %75 = tpu.matmul %62, %74, %cst_53 {dimension_numbers = #tpu.dot_dimension_numbers<[1], [0], [0], [1], [0, 0, 1, 1], [], []>} : vector<8x4xf32>, vector<4x128xf32>, vector<8x128xf32> -> vector<8x128xf32>
    %76 = arith.addf %73, %75 : vector<8x128xf32>
    %77 = arith.truncf %68 : vector<8x8xf32> to vector<8x8xbf16>
    %c0_54 = arith.constant 0 : index
    %c0_55 = arith.constant 0 : index
    %78 = vector.load %arg17[%c0_54, %c0_55] : memref<8x128xbf16, #tpu.memory_space<vmem>>, vector<8x128xbf16>
    %cst_56 = arith.constant dense<0.000000e+00> : vector<8x128xf32>
    %79 = tpu.matmul %77, %78, %cst_56 {dimension_numbers = #tpu.dot_dimension_numbers<[1], [0], [0], [1], [0, 0, 1, 1], [], []>} : vector<8x8xbf16>, vector<8x128xbf16>, vector<8x128xf32> -> vector<8x128xf32>
    %80 = arith.addf %76, %79 : vector<8x128xf32>
    %c0_57 = arith.constant 0 : index
    %c0_58 = arith.constant 0 : index
    %81 = vector.load %arg20[%c0_57, %c0_58] : memref<1x128xf32, #tpu.memory_space<vmem>>, vector<1x128xf32>
    %82 = vector.broadcast %70 : vector<8x1xf32> to vector<8x128xf32>
    %83 = vector.broadcast %81 : vector<1x128xf32> to vector<8x128xf32>
    %84 = arith.mulf %82, %83 : vector<8x128xf32>
    %85 = arith.addf %80, %84 : vector<8x128xf32>
    %c0_59 = arith.constant 0 : index
    %c0_60 = arith.constant 0 : index
    %86 = vector.load %arg21[%c0_59, %c0_60] : memref<1x128xf32, #tpu.memory_space<vmem>>, vector<1x128xf32>
    %87 = vector.broadcast %86 : vector<1x128xf32> to vector<8x128xf32>
    %88 = arith.addf %85, %87 : vector<8x128xf32>
    %c0_61 = arith.constant 0 : index
    %c0_62 = arith.constant 0 : index
    %89 = vector.load %arg22[%c0_61, %c0_62] : memref<8x128xf32, #tpu.memory_space<vmem>>, vector<8x128xf32>
    tpu.vector_store %arg22[%c0_61, %c0_62], %88 {strides = array<i32>} : memref<8x128xf32, #tpu.memory_space<vmem>>, vector<8x128xf32>,
    return
  }
  func.func @transform_0(%arg0: i32) -> (i32, i32) {
    %c0_i32 = arith.constant 0 : i32
    %c0_i32_0 = arith.constant 0 : i32
    return %arg0, %c0_i32 : i32, i32
  }
  func.func @transform_1(%arg0: i32) -> (i32, i32) {
    %c0_i32 = arith.constant 0 : i32
    %c0_i32_0 = arith.constant 0 : i32
    %c0_i32_1 = arith.constant 0 : i32
    return %c0_i32, %c0_i32_0 : i32, i32
  }
  func.func @transform_2(%arg0: i32) -> (i32, i32) {
    %c0_i32 = arith.constant 0 : i32
    %c0_i32_0 = arith.constant 0 : i32
    %c0_i32_1 = arith.constant 0 : i32
    return %c0_i32, %c0_i32_0 : i32, i32
  }
  func.func @transform_3(%arg0: i32) -> (i32, i32) {
    %c0_i32 = arith.constant 0 : i32
    %c0_i32_0 = arith.constant 0 : i32
    %c0_i32_1 = arith.constant 0 : i32
    return %c0_i32, %c0_i32_0 : i32, i32
  }
  func.func @transform_4(%arg0: i32) -> (i32, i32) {
    %c0_i32 = arith.constant 0 : i32
    %c0_i32_0 = arith.constant 0 : i32
    %c0_i32_1 = arith.constant 0 : i32
    return %c0_i32, %c0_i32_0 : i32, i32
  }
  func.func @transform_5(%arg0: i32) -> (i32, i32) {
    %c0_i32 = arith.constant 0 : i32
    %c0_i32_0 = arith.constant 0 : i32
    %c0_i32_1 = arith.constant 0 : i32
    return %c0_i32, %c0_i32_0 : i32, i32
  }
  func.func @transform_6(%arg0: i32) -> (i32, i32) {
    %c0_i32 = arith.constant 0 : i32
    %c0_i32_0 = arith.constant 0 : i32
    %c0_i32_1 = arith.constant 0 : i32
    return %c0_i32, %c0_i32_0 : i32, i32
  }
  func.func @transform_7(%arg0: i32) -> (i32, i32) {
    %c0_i32 = arith.constant 0 : i32
    %c0_i32_0 = arith.constant 0 : i32
    %c0_i32_1 = arith.constant 0 : i32
    return %c0_i32, %c0_i32_0 : i32, i32
  }
  func.func @transform_8(%arg0: i32) -> (i32, i32) {
    %c0_i32 = arith.constant 0 : i32
    %c0_i32_0 = arith.constant 0 : i32
    %c0_i32_1 = arith.constant 0 : i32
    return %c0_i32, %c0_i32_0 : i32, i32
  }
  func.func @transform_9(%arg0: i32) -> (i32, i32) {
    %c0_i32 = arith.constant 0 : i32
    %c0_i32_0 = arith.constant 0 : i32
    %c0_i32_1 = arith.constant 0 : i32
    return %c0_i32, %c0_i32_0 : i32, i32
  }
  func.func @transform_10(%arg0: i32) -> (i32, i32) {
    %c0_i32 = arith.constant 0 : i32
    %c0_i32_0 = arith.constant 0 : i32
    %c0_i32_1 = arith.constant 0 : i32
    return %c0_i32, %c0_i32_0 : i32, i32
  }
  func.func @transform_11(%arg0: i32) -> (i32, i32) {
    %c0_i32 = arith.constant 0 : i32
    %c0_i32_0 = arith.constant 0 : i32
    %c0_i32_1 = arith.constant 0 : i32
    return %c0_i32, %c0_i32_0 : i32, i32
  }
  func.func @transform_12(%arg0: i32) -> (i32, i32) {
    %c0_i32 = arith.constant 0 : i32
    %c0_i32_0 = arith.constant 0 : i32
    %c0_i32_1 = arith.constant 0 : i32
    return %c0_i32, %c0_i32_0 : i32, i32
  }
  func.func @transform_13(%arg0: i32) -> (i32, i32) {
    %c0_i32 = arith.constant 0 : i32
    %c0_i32_0 = arith.constant 0 : i32
    %c0_i32_1 = arith.constant 0 : i32
    return %c0_i32, %c0_i32_0 : i32, i32
  }
  func.func @transform_14(%arg0: i32) -> (i32, i32) {
    %c0_i32 = arith.constant 0 : i32
    %c0_i32_0 = arith.constant 0 : i32
    %c0_i32_1 = arith.constant 0 : i32
    return %c0_i32, %c0_i32_0 : i32, i32
  }
  func.func @transform_15(%arg0: i32) -> (i32, i32) {
    %c0_i32 = arith.constant 0 : i32
    %c0_i32_0 = arith.constant 0 : i32
    %c0_i32_1 = arith.constant 0 : i32
    return %c0_i32, %c0_i32_0 : i32, i32
  }
  func.func @transform_16(%arg0: i32) -> (i32, i32) {
    %c0_i32 = arith.constant 0 : i32
    %c0_i32_0 = arith.constant 0 : i32
    %c0_i32_1 = arith.constant 0 : i32
    return %c0_i32, %c0_i32_0 : i32, i32
  }
  func.func @transform_17(%arg0: i32) -> (i32, i32) {
    %c0_i32 = arith.constant 0 : i32
    %c0_i32_0 = arith.constant 0 : i32
    %c0_i32_1 = arith.constant 0 : i32
    return %c0_i32, %c0_i32_0 : i32, i32
  }
  func.func @transform_18(%arg0: i32) -> (i32, i32) {
    %c0_i32 = arith.constant 0 : i32
    %c0_i32_0 = arith.constant 0 : i32
    %c0_i32_1 = arith.constant 0 : i32
    return %c0_i32, %c0_i32_0 : i32, i32
  }
  func.func @transform_19(%arg0: i32) -> (i32, i32) {
    %c0_i32 = arith.constant 0 : i32
    %c0_i32_0 = arith.constant 0 : i32
    %c0_i32_1 = arith.constant 0 : i32
    return %c0_i32, %c0_i32_0 : i32, i32
  }
  func.func @transform_20(%arg0: i32) -> (i32, i32) {
    %c0_i32 = arith.constant 0 : i32
    %c0_i32_0 = arith.constant 0 : i32
    %c0_i32_1 = arith.constant 0 : i32
    return %c0_i32, %c0_i32_0 : i32, i32
  }
  func.func @transform_21(%arg0: i32) -> (i32, i32) {
    %c0_i32 = arith.constant 0 : i32
    %c0_i32_0 = arith.constant 0 : i32
    return %arg0, %c0_i32 : i32, i32
  }
}

</mosaic_0001>

<bundles_post_ra>
// kernel: tpu_custom_call.1
= control target key start
LH: loop header
LB: loop body
LE: loop exit
PB: predicated region body
PF: predicated region fallthrough
CT: control target
= control target key end

     0   :  { %s1467_s0 = inlined_call_operand.vmem [shape: bf16[8,128], index: 0, kind: input, shape index: {}]   ;;  %s1468_s1 = inlined_call_operand.vmem [shape: bf16[128,16], index: 1, kind: input, shape index: {}]   ;;  %s1469_s2 = inlined_call_operand.vmem [shape: f32[1,16], index: 2, kind: input, shape index: {}]   ;;  %s1470_s3 = inlined_call_operand.vmem [shape: bf16[16,32], index: 3, kind: input, shape index: {}]   ;;  %s1471_s4 = inlined_call_operand.vmem [shape: f32[1,32], index: 4, kind: input, shape index: {}]   ;;  %s1472_s5 = inlined_call_operand.vmem [shape: bf16[32,16], index: 5, kind: input, shape index: {}]   ;;  %s1473_s6 = inlined_call_operand.vmem [shape: f32[1,16], index: 6, kind: input, shape index: {}]   ;;  %s1474_s7 = inlined_call_operand.vmem [shape: bf16[16,16], index: 7, kind: input, shape index: {}]   ;;  %s1475_s8 = inlined_call_operand.vmem [shape: f32[1,16], index: 8, kind: input, shape index: {}]   ;;  %s1476_s9 = inlined_call_operand.vmem [shape: bf16[16,32], index: 9, kind: input, shape index: {}]   ;;  %s1477_s10 = inlined_call_operand.vmem [shape: f32[1,32], index: 10, kind: input, shape index: {}]   ;;  %s1478_s11 = inlined_call_operand.vmem [shape: f32[16,4], index: 11, kind: input, shape index: {}]   ;;  %s1479_s12 = inlined_call_operand.vmem [shape: f32[1,4], index: 12, kind: input, shape index: {}]   ;;  %s1480_s13 = inlined_call_operand.vmem [shape: bf16[16,8], index: 13, kind: input, shape index: {}]   ;;  %s1481_s14 = inlined_call_operand.vmem [shape: f32[1,8], index: 14, kind: input, shape index: {}]   ;;  %s1482_s15 = inlined_call_operand.vmem [shape: bf16[32,128], index: 15, kind: input, shape index: {}]   ;;  %s1483_s16 = inlined_call_operand.vmem [shape: bf16[8,128], index: 16, kind: input, shape index: {}]   ;;  %s1484_s17 = inlined_call_operand.vmem [shape: bf16[128,1], index: 17, kind: input, shape index: {}]   ;;  %s1485_s18 = inlined_call_operand.vmem [shape: f32[4,128], index: 18, kind: input, shape index: {}]   ;;  %s1486_s19 = inlined_call_operand.vmem [shape: f32[1,128], index: 19, kind: input, shape index: {}]   ;;  %s1487_s20 = inlined_call_operand.vmem [shape: f32[1,128], index: 20, kind: input, shape index: {}]   ;;  %s1488_s21 = inlined_call_operand.hbm [shape: f32[8,128], index: 21, kind: output, shape index: {}]  }
   0x1   :  { %1491 = sst [smem:[#allocation5_spill]] %s1467_s0 }
   0x2   :  { %1492 = sst [smem:[#allocation6_spill]] %s1468_s1 }
   0x3   :  { %1493 = sst [smem:[#allocation7_spill]] %s1469_s2 }
   0x4   :  { %1494 = sst [smem:[#allocation8_spill]] %s1470_s3 }
   0x5   :  { %1495 = sst [smem:[#allocation9_spill]] %s1471_s4 }
   0x6   :  { %1496 = sst [smem:[#allocation10_spill]] %s1472_s5 }
   0x7   :  { %s1497_s26 = sld [smem:[#allocation6_spill]]  ;;  %v1159_v1 = vmov 0.0   ;;  %vm1160_vm0 = vmmov 0  }
   0x8   :  { %997 = vmatprep.subr.bf16.mxu0 %v1159_v1  ;;  %1017 = vmatprep.subr.bf16.mxu1 %v1159_v1 }
   0x9   :  { %1013 = vmatprep.mubr.msk.bf16.mxu0 %vm1160_vm0, %v1159_v1  ;;  %1019 = vmatprep.mubr.msk.bf16.mxu1 %vm1160_vm0, %v1159_v1 }
   0xd   :  { %v1105_v0 = vld [vmem:[%s1497_s26] sm:$0xff]   ;;  %v1106_v2 = vld [vmem:[%s1497_s26 + $0x8] sm:$0xff]   ;;  %v1107_v3 = vld [vmem:[%s1497_s26 + $0x10] sm:$0xff]  }
   0xe   :  { %998 = vmatpush3.bf16.msra.mxu0 %v1105_v0  ;;  %v1108_v4 = vld [vmem:[%s1497_s26 + $0x18] sm:$0xff]   ;;  %v1109_v5 = vld [vmem:[%s1497_s26 + $0x20] sm:$0xff]   ;;  %v1110_v6 = vld [vmem:[%s1497_s26 + $0x28] sm:$0xff]  }
   0xf   :  { %999 = vmatprep.subr.bf16.mxu0 %v1159_v1 }
  0x12   :  { %1000 = vmatpush3.bf16.msra.mxu0 %v1106_v2 }
  0x13   :  { %1001 = vmatprep.subr.bf16.mxu0 %v1159_v1 }
  0x16   :  { %1002 = vmatpush3.bf16.msra.mxu0 %v1107_v3 }
  0x17   :  { %1003 = vmatprep.subr.bf16.mxu0 %v1159_v1 }
  0x1a   :  { %1004 = vmatpush3.bf16.msra.mxu0 %v1108_v4 }
  0x1b   :  { %1005 = vmatprep.subr.bf16.mxu0 %v1159_v1 }
  0x1e   :  { %1006 = vmatpush3.bf16.msra.mxu0 %v1109_v5 }
  0x1f   :  { %1007 = vmatprep.subr.bf16.mxu0 %v1159_v1 }
  0x20   :  { %26 = vsyncpa [#allocation3], 0  ;;  %v1111_v7 = vld [vmem:[%s1497_s26 + $0x30] sm:$0xff]   ;;  %v1112_v8 = vld [vmem:[%s1497_s26 + $0x38] sm:$0xff]   ;;  %s1498_s28 = sld [smem:[#allocation5_spill]]  ;;  %s1499_s4 = sld [smem:[#allocation8_spill]] }
  0x21   :  { %s1500_s5 = sld [smem:[#allocation7_spill]]  ;;  %vm199_vm1 = vcmask 130048   ;;  %s1501_s1 = sld [smem:[#allocation10_spill]]  ;;  %vm268_vm2 = vcmask 261120   ;;  %v1116_v29 = vld [vmem:[%s1474_s7] sm:$0xff]   ;;  %v1161_v42 = vmov 0.0|0.0  }
  0x22   :  { %1008 = vmatpush3.bf16.msra.mxu0 %v1110_v6  ;;  %s1502_s3 = sld [smem:[#allocation9_spill]]  ;;  %v1117_v30 = vld [vmem:[%s1480_s13] sm:$0xff]   ;;  %v438_v50 = vld [vmem:[%s1478_s11 + $0x8] sm:$0xff]  ;;  %v1121_v60 = vld [vmem:[%s1484_s17 + $0x10] sm:$0xff]   ;;  %vm525_vm3 = vcmask 31744   ;;  %vm699_vm4 = vcmask 1043456  }
  0x23   :  { %1009 = vmatprep.subr.bf16.mxu0 %v1159_v1  ;;  %v927_v31 = vld [vmem:[%s1473_s6] ss:$0 sm:$0xff]  ;;  %v1120_v59 = vld [vmem:[%s1484_s17 + $0x8] sm:$0xff]   ;;  %v1122_v61 = vld [vmem:[%s1484_s17 + $0x18] sm:$0xff]   ;;  %vm830_vm5 = vcmask 64512  }
  0x24   :  { %v1118_v41 = vld [vmem:[%s1476_s9] sm:$0xff]   ;;  %v1124_v63 = vld [vmem:[%s1484_s17 + $0x28] sm:$0xff]   ;;  %v1125_v0 = vld [vmem:[%s1484_s17 + $0x30] sm:$0xff]  }
  0x25   :  { %v931_v43 = vld [vmem:[%s1475_s8] ss:$0 sm:$0xff]  ;;  %v1126_v2 = vld [vmem:[%s1484_s17 + $0x38] sm:$0xff]  }
  0x26   :  { %1010 = vmatpush3.bf16.msra.mxu0 %v1111_v7  ;;  %v1314_v9 = vld [vmem:[%s1498_s28] sm:$0xf] }
  0x27   :  { %1011 = vmatprep.subr.bf16.mxu0 %v1159_v1  ;;  %v1113_v10 = vld [vmem:[%s1499_s4] sm:$0xff]   ;;  %v1115_v20 = vld [vmem:[%s1501_s1 + $0x8] sm:$0xff]  }
  0x28   :  { %1018 = vmatpush3.bf16.msra.mxu1 %v1113_v10  ;;  %v915_v11 = vld [vmem:[%s1500_s5] ss:$0 sm:$0xff] }
  0x29   :  { %1023 = vmatprep.subr.bf16.mxu1 %v1159_v1  ;;  %v1114_v19 = vld [vmem:[%s1501_s1] sm:$0xff]  }
  0x2a   :  { %1012 = vmatpush3.bf16.msra.mxu0 %v1112_v8  ;;  %v924_v21 = vld [vmem:[%s1502_s3] ss:$0 sm:$0xff]  ;;  %s1163_s3 = smov [#allocation2]  }
  0x2b   :  { %1050 = vmatprep.subr.bf16.mxu0 %v1159_v1  ;;  %v437_v49 = vld [vmem:[%s1478_s11] sm:$0xff]  ;;  %s907_s28 = sshll.u32 %s1163_s3, 4  ;;  %s908_s28 = int_to_ptr.vmem [resolvable:$true] %s907_s28 }
  0x2c   :  { %v1096_v56 = vpack.c.bf16 %v438_v50, %v437_v49  ;;  %v1119_v58 = vld [vmem:[%s1484_s17] sm:$0xff]   ;;  %s1135_s29 = scalar_lea.vmem %s908_s28, 128  ;;  %p1140_p1 = scmp.lt.s32.totalorder %s908_s28, %s908_s28 }
  0x2d   :  { %1014 = vmatmul.mubr.bf16.vlgmr.msra.gmra.mrb[0].mxu0 %v1314_v9  ;;  %v1123_v62 = vld [vmem:[%s1484_s17 + $0x20] sm:$0xff]   ;;  %p1136_p0 = scmp.ne.s32.totalorder %s908_s28, %s1135_s29  ;;  %p1141_p2 = scmp.lt.s32.totalorder %s1135_s29, %s1135_s29 }
  0x2e   :  { %1052 = vmatprep.mubr.msk.bf16.mxu0 %vm1160_vm0, %v1159_v1  ;;  %1051 = vmatpush3.bf16.msra.mxu0 %v1117_v30  ;;  %v938_v7 = vld [vmem:[%s1479_s12] ss:$0 sm:$0xff]  ;;  %v1128_v30 = vld [vmem:[%s1482_s15 + $0x8] sm:$0xff]  }
  0x2f   :  { %1076 = vmatprep.subr.mxu0 %v1159_v1  ;;  %p1142_p3 = por %p1141_p2, %p1140_p1 }
  0x31   :  { %p1143_p4 = pnand %p1142_p3, %p1136_p0 }
 0x100   :  { %v176_v12 = vpop.f32.mrb[0].mxu0 }
 0x101   :  { %v177_v13 = vadd.f32 %v915_v11, %v176_v12  ;;  %v1015_v14 = vpop.f32.mrb[1].mxu0 }
 0x102   :  { %v179_v15 = vpop.f32.mrb[2].mxu0 }
 0x103   :  { %1129 = vtanh.f32 %v177_v13  ;;  %v1016_v16 = vpop.f32.mrb[3].mxu0 }
 0x10d   :  { %v1130_v17 = vpop.eup %1129 }
 0x10e   :  { %v183_v18 = vpack.c.bf16 %v1130_v17, %v1130_v17 }
 0x110   :  { %1020 = vmatmul.mubr.msk.bf16.vlgmr.msra.gmra.mrb[0].mxu1 %vm199_vm1, %v183_v18  ;;  %v695_v18 = vld [vmem:[%s1485_s18] sm:$0xf] }
 0x111   :  { %1027 = vmatprep.mubr.msk.bf16.mxu1 %vm1160_vm0, %v1159_v1  ;;  %1024 = vmatpush3.bf16.msra.mxu1 %v1114_v19  ;;  %v1162_v19 = vmov 0  }
 0x112   :  { %1025 = vmatprep.subr.bf16.mxu1 %v1159_v1  ;;  %1103 = vset.pattern.permute.xlu1 %v1162_v19 }
 0x113   :  { %1104 = vset.pattern.permute.xlu0 %v1162_v19 }
 0x115   :  { %1026 = vmatpush3.bf16.msra.mxu1 %v1115_v20 }
 0x116   :  { %1031 = vmatprep.subr.bf16.mxu1 %v1159_v1 }
 0x1e3   :  { %v237_v22 = vpop.f32.mrb[0].mxu1 }
 0x1e4   :  { %v238_v23 = vadd.f32 %v924_v21, %v237_v22  ;;  %v1021_v24 = vpop.f32.mrb[1].mxu1 }
 0x1e5   :  { %v240_v25 = vpop.f32.mrb[2].mxu1 }
 0x1e6   :  { %v243_v26 = vmax.f32 %v238_v23, 0.0  ;;  %v1022_v27 = vpop.f32.mrb[3].mxu1  ;;  %v934_v25 = vld [vmem:[%s1477_s10] ss:$0 sm:$0xff] }
 0x1e7   :  { %v1127_v27 = vld [vmem:[%s1482_s15] sm:$0xff]  }
 0x1e8   :  { %v244_v28 = vpack.c.bf16 %v243_v26, %v243_v26 }
 0x1ea   :  { %1028 = vmatmul.mubr.msk.bf16.vlgmr.msra.gmra.mrb[4].mxu1 %vm268_vm2, %v244_v28 }
 0x1eb   :  { %1033 = vmatprep.mubr.msk.bf16.mxu1 %vm1160_vm0, %v1159_v1  ;;  %1032 = vmatpush3.bf16.msra.mxu1 %v1116_v29 }
 0x1ec   :  { %1037 = vmatprep.subr.bf16.mxu1 %v1159_v1 }
 0x2bd   :  { %v306_v32 = vpop.f32.mrb[4].mxu1 }
 0x2be   :  { %v307_v33 = vadd.f32 %v927_v31, %v306_v32  ;;  %v1029_v34 = vpop.f32.mrb[5].mxu1  ;;  %v829_v32 = vld [vmem:[%s1483_s16] sm:$0xf] }
 0x2bf   :  { %v309_v35 = vpop.f32.mrb[6].mxu1  ;;  %v835_v34 = vsel %vm699_vm4, %v829_v32, 0 }
 0x2c0   :  { %v312_v36 = vmax.f32 %v307_v33, 0.0  ;;  %v1030_v37 = vpop.f32.mrb[7].mxu1  ;;  %v939_v35 = vld [vmem:[%s1481_s14] ss:$0 sm:$0xff] }
 0x2c2   :  { %v313_v38 = vpack.c.bf16 %v312_v36, %v312_v36  ;;  %v433_v39 = vmul.f32 %v312_v36, %v312_v36 }
 0x2c4   :  { %1034 = vmatmul.mubr.msk.bf16.vlgmr.msra.gmra.mrb[8].mxu1 %vm199_vm1, %v313_v38  ;;  %1053 = vmatmul.mubr.msk.bf16.vlgmr.msra.gmra.mrb[4].mxu0 %vm199_vm1, %v313_v38  ;;  %v434_v40 = vsel %vm199_vm1, %v433_v39, 0.0 }
 0x2c5   :  { %435 = vadd.xlane.f32.xlu0 %v434_v40  ;;  %1039 = vmatprep.mubr.msk.bf16.mxu1 %vm1160_vm0, %v1159_v1 }
 0x2c6   :  { %1078 = vmatprep.mubr.msk.f32.mxu0 %vm1160_vm0, %v1159_v1  ;;  %1038 = vmatpush3.bf16.msra.mxu1 %v1118_v41 }
 0x2c7   :  { %1095 = vmatprep.subr.bf16.mxu1 %v1161_v42  ;;  %1077 = vmatpush3.msk.msra.mxu0 %vm699_vm4, %v695_v18 }
 0x2c8   :  { %1081 = vmatprep.subr.bf16.mxu0 %v1159_v1 }
 0x352   :  { %v436_v8 = vpop.xlane.xlu0 %435 }
 0x353   :  { %v519_v11 = vadd.f32 %v938_v7, %v436_v8 }
 0x397   :  { %v366_v44 = vpop.f32.mrb[8].mxu1  ;;  %v1368_v45 = vpop.f32.mrb[4].mxu0 }
 0x398   :  { %v367_v46 = vadd.f32 %v931_v43, %v366_v44  ;;  %v1035_v47 = vpop.f32.mrb[9].mxu1  ;;  %v1054_v48 = vpop.f32.mrb[5].mxu0 }
 0x399   :  { %v369_v51 = vpop.f32.mrb[10].mxu1  ;;  %v583_v52 = vpop.f32.mrb[6].mxu0 }
 0x39a   :  { %v372_v53 = vmax.f32 %v367_v46, 0.0  ;;  %v1036_v54 = vpop.f32.mrb[11].mxu1  ;;  %v1055_v55 = vpop.f32.mrb[7].mxu0  ;;  %v956_v46 = vld [vmem:[%s1486_s19] ss:$0 sm:$0xff] }
 0x39b   :  { %v957_v51 = vld [vmem:[%s1487_s20] ss:$0 sm:$0xff] }
 0x39c   :  { %v373_v57 = vpack.c.bf16 %v372_v53, %v372_v53 }
 0x39e   :  { %1040 = vmatmul.mubr.msk.bf16.vlgmr.msra.gmra.mrb[12].mxu1 %vm199_vm1, %v373_v57 }
 0x39f   :  { %1097 = vmatpush3.bf16.msra.mxu1 %v1096_v56  ;;  %1047 = vmatprep.mubr.msk.f32.mxu1 %vm1160_vm0, %v1159_v1 }
 0x3a0   :  { %1056 = vmatprep.subr.bf16.mxu1 %v1159_v1 }
 0x3a6   :  { %1048 = vmatmul.mubr.msk.f32.vlgmr.msra.gmra.mrb[16].mxu1 %vm199_vm1, %v312_v36  ;;  %v581_v36 = vadd.f32 %v939_v35, %v1368_v45 }
 0x3a7   :  { %1072 = vmatprep.mubr.msk.bf16.mxu1 %vm1160_vm0, %v1159_v1  ;;  %1057 = vmatpush3.bf16.msra.mxu1 %v1119_v58 }
 0x3a8   :  { %1058 = vmatprep.subr.bf16.mxu1 %v1159_v1  ;;  %v828_v37 = vpack.c.bf16 %v581_v36, %v581_v36 }
 0x3ab   :  { %1059 = vmatpush3.bf16.msra.mxu1 %v1120_v59 }
 0x3ac   :  { %1060 = vmatprep.subr.bf16.mxu1 %v1159_v1 }
 0x3af   :  { %1061 = vmatpush3.bf16.msra.mxu1 %v1121_v60 }
 0x3b0   :  { %1062 = vmatprep.subr.bf16.mxu1 %v1159_v1 }
 0x3b3   :  { %1063 = vmatpush3.bf16.msra.mxu1 %v1122_v61 }
 0x3b4   :  { %1064 = vmatprep.subr.bf16.mxu1 %v1159_v1 }
 0x3b7   :  { %1065 = vmatpush3.bf16.msra.mxu1 %v1123_v62 }
 0x3b8   :  { %1066 = vmatprep.subr.bf16.mxu1 %v1159_v1 }
 0x3bb   :  { %1067 = vmatpush3.bf16.msra.mxu1 %v1124_v63 }
 0x3bc   :  { %1068 = vmatprep.subr.bf16.mxu1 %v1159_v1 }
 0x3bf   :  { %1069 = vmatpush3.bf16.msra.mxu1 %v1125_v0 }
 0x3c0   :  { %1070 = vmatprep.subr.bf16.mxu1 %v1159_v1 }
 0x3c3   :  { %1071 = vmatpush3.bf16.msra.mxu1 %v1126_v2 }
 0x3c6   :  { %1073 = vmatmul.mubr.bf16.vlgmr.msra.gmra.mrb[20].mxu1 %v1314_v9 }
 0x471   :  { %v426_v3 = vpop.f32.mrb[12].mxu1 }
 0x472   :  { %v1041_v4 = vpop.f32.mrb[13].mxu1  ;;  %v427_v28 = vadd.f32 %v934_v25, %v426_v3 }
 0x473   :  { %v429_v5 = vpop.f32.mrb[14].mxu1 }
 0x474   :  { %v1042_v6 = vpop.f32.mrb[15].mxu1  ;;  %v432_v31 = vmax.f32 %v427_v28, 0.0 }
 0x476   :  { %v690_v33 = vpack.c.bf16 %v432_v31, %v432_v31 }
 0x479   :  { %v508_v10 = vpop.f32.mrb[16].mxu1 }
 0x47a   :  { %v520_v12 = vmul.f32 2.0, %v508_v10  ;;  %v1049_v13 = vpop.f32.mrb[17].mxu1 }
 0x47c   :  { %v521_v14 = vsub.f32 %v519_v11, %v520_v12 }
 0x47e   :  { %v522_v15 = vmax.f32 %v521_v14, 0.0 }
 0x480   :  { %v523_v16 = vadd.f32 1.0, %v522_v15 }
 0x482   :  { %1131 = vrcp.f32 %v523_v16 }
 0x48c   :  { %v1132_v17 = vpop.eup %1131 }
 0x48d   :  { %v526_v9 = vsel %vm525_vm3, %v1132_v17, 0.0 }
 0x48e   :  { %527 = vadd.xlane.f32.xlu0 %v526_v9 }
 0x499   :  { %v684_v20 = vpop.f32.mrb[20].mxu1 }
 0x49a   :  { %v1074_v21 = vpop.f32.mrb[21].mxu1  ;;  %881 = vperm.xlu1 %1103, %v684_v20  }
 0x49b   :  { %v687_v22 = vpop.f32.mrb[22].mxu1 }
 0x49c   :  { %v1075_v23 = vpop.f32.mrb[23].mxu1 }
 0x519   :  { %v882_v47 = vpop.permute.xlu1 %881 }
 0x51a   :  { %v890_v48 = vmul.f32 %v956_v46, %v882_v47 }
 0x51b   :  { %v528_v24 = vpop.xlane.xlu0 %527 }
 0x51c   :  { %1133 = vrcp.f32 %v528_v24 }
 0x526   :  { %v1134_v26 = vpop.eup %1133 }
 0x527   :  { %v530_v29 = vmul.f32 %v1134_v26, %v1132_v17 }
 0x529   :  { %1079 = vmatmul.mubr.msk.f32.vlgmr.msra.gmra.mrb[8].mxu0 %vm525_vm3, %v530_v29 }
 0x52a   :  { %1082 = vmatpush3.bf16.msra.mxu0 %v1127_v27  ;;  %1085 = vmatprep.mubr.msk.bf16.mxu0 %vm1160_vm0, %v1159_v1 }
 0x52b   :  { %1083 = vmatprep.subr.bf16.mxu0 %v1159_v1 }
 0x52e   :  { %1084 = vmatpush3.bf16.msra.mxu0 %v1128_v30 }
 0x52f   :  { %1089 = vmatprep.subr.bf16.mxu0 %v1159_v1 }
 0x531   :  { %1086 = vmatmul.mubr.msk.bf16.vlgmr.msra.gmra.mrb[12].mxu0 %vm268_vm2, %v690_v33 }
 0x532   :  { %1090 = vmatpush3.bf16.msra.mxu0 %v835_v34  ;;  %1091 = vmatprep.mubr.msk.bf16.mxu0 %vm1160_vm0, %v1159_v1 }
 0x539   :  { %1092 = vmatmul.mubr.msk.bf16.vlgmr.msra.gmra.mrb[16].mxu0 %vm830_vm5, %v828_v37 }
 0x5fc   :  { %v769_v38 = vpop.f32.mrb[8].mxu0 }
 0x5fd   :  { %v1080_v39 = vpop.f32.mrb[9].mxu0 }
 0x604   :  { %v822_v40 = vpop.f32.mrb[12].mxu0 }
 0x605   :  { %v823_v41 = vadd.f32 %v822_v40, %v769_v38  ;;  %v1087_v42 = vpop.f32.mrb[13].mxu0 }
 0x606   :  { %v825_v43 = vpop.f32.mrb[14].mxu0 }
 0x607   :  { %v1088_v44 = vpop.f32.mrb[15].mxu0 }
 0x60c   :  { %v871_v49 = vpop.f32.mrb[16].mxu0 }
 0x60d   :  { %v877_v1 = vadd.f32 %v871_v49, %v823_v41  ;;  %v1093_v50 = vpop.f32.mrb[17].mxu0 }
 0x60e   :  { %v874_v45 = vpop.f32.mrb[18].mxu0 }
 0x60f   :  { %v891_v52 = vadd.f32 %v890_v48, %v877_v1  ;;  %v1094_v53 = vpop.f32.mrb[19].mxu0 }
 0x611   :  { %v899_v54 = vadd.f32 %v957_v51, %v891_v52 }
 0x613   :  { %900 = vst [vmem:[#allocation2] sm:$0xff] %v899_v54 }
 0x614   :  { %1146 = shalt.err (!%p1143_p4)
}
 0x615   :  { %s1147_s4 = scalar_lea.hbm %s1488_s21, 128 }
 0x616   :  { %p1148_p5 = scmp.ne.s32.totalorder %s1488_s21, %s1147_s4  ;;  %p1151_p6 = scmp.lt.u32.totalorder %s1147_s4, %s1488_s21 }
 0x618   :  { %p1153_p7 = pnand %p1151_p6, %p1148_p5 }
 0x61a   :  { %1156 = shalt.err (!%p1153_p7)
}
 0x61b   :  { %910 = dma.vmem_to_hbm [thread:$0]  %s908_s28, 128, %s1488_s21, [#allocation3]  }
 0x61c   :  { %1157 = dma.done.wait [#allocation3], 128  }
 0x61d   :  { %1158 = vsyncadd [#allocation3], 4294967168 }
 0x61e   :  { %914 = vsyncpa [#allocation3], 1 }

</bundles_post_ra>
